<compile_context>
chip_gen: v6e
topology: v6e:2x2x1
jax: 0.10.0
libtpu: 0.0.40
codegen_flags: <defaults>
</compile_context>

<pallas_src>
import functools

import jax
import jax.numpy as jnp
from jax.experimental import pallas as pl
from jax.experimental.pallas import tpu as pltpu


# ---------------------------------------------------------------------------
# Kernel
# ---------------------------------------------------------------------------
def _down_kernel(x_ref, wrow_ref, bp_ref,
                 paw1_ref, pab1_ref, paw2_ref, pab2_ref,
                 caw1_ref, cab1_ref, caw2_ref, cab2_ref,
                 out_ref, res_ref, halo_ref, *, Hp, Wp, Cin, Cout):
    Nb = x_ref.shape[0]
    Lin = Wp * Cin            # packed input row width (lanes)
    Lout = Wp * Cout          # packed output row width (lanes)
    Krow = (Wp + 2) * Cin     # haloed row width == matmul K per kernel row
    R = Nb * Hp               # matmul M (rows)

    # ---- 3x3 conv (pad=1) via halo scratch + banded row weights -----------
    # Zero the halo once per block, then place the pooled rows at
    # (+1 row, +Cin lane); the left/right/top/bottom borders stay zero, which
    # implements the conv's zero padding with no rolls or masks.
    halo_ref[...] = jnp.zeros_like(halo_ref)
    halo_ref[:, 1:Hp + 1, Cin:Cin + Lin] = x_ref[...].astype(halo_ref.dtype)

    acc = None
    for di in range(3):       # one accumulating MXU matmul per kernel row
        a = halo_ref[:, di:di + Hp, :].reshape(R, Krow).astype(wrow_ref.dtype)
        part = jnp.dot(a, wrow_ref[di], preferred_element_type=jnp.float32)
        acc = part if acc is None else acc + part
    acc = acc + bp_ref[...]                                   # (R, Lout) f32

    # ---- PALayer: per-pixel 1x1 convs on the packed rows -------------------
    t = jnp.maximum(
        jnp.dot(acc, paw1_ref[...], preferred_element_type=jnp.float32)
        + pab1_ref[...], 0.0)                                  # (R, Wp*cr)
    # pa_w2 (cr->1) is replicated across the pixel's Cout lanes inside the
    # packed weight, so this MXU result is already lane-dense (Lout wide) and
    # no per-pixel lane-repeat is needed afterwards.
    s = jax.nn.sigmoid(
        jnp.dot(t, paw2_ref[...], preferred_element_type=jnp.float32)
        + pab2_ref[...])                                       # (R, Lout)
    y = acc * s

    # ---- CALayer: per-image global average pool + 1x1 convs ----------------
    # TODO(synk): for very small Nb these two dots have M=Nb rows; a VPU
    #   lane-reduce form would avoid two near-empty MXU passes.
    y3 = y.reshape(Nb, Hp, Lout)
    g = jnp.mean(y3, axis=1)                                   # (Nb, Lout); 1/Wp folded into caw1
    t2 = jnp.maximum(
        jnp.dot(g, caw1_ref[...], preferred_element_type=jnp.float32)
        + cab1_ref[...], 0.0)                                  # (Nb, cr)
    s2 = jax.nn.sigmoid(
        jnp.dot(t2, caw2_ref[...], preferred_element_type=jnp.float32)
        + cab2_ref[...])                                       # (Nb, Lout), replication over pixels folded in
    y3 = y3 * s2[:, None, :]

    # ---- ReLU + residual (y - relu(y) == min(y, 0)); lane-dense stores ------
    out_ref[...] = jnp.maximum(y3, 0.0).astype(out_ref.dtype)
    res_ref[...] = jnp.minimum(y3, 0.0).astype(res_ref.dtype)


# ---------------------------------------------------------------------------
# Weight packing (wrapper-side, tiny tensors)
# ---------------------------------------------------------------------------
def _pack_params(p, Wp, *, matmul_dtype):
    Cin, Cout = p["conv_w"].shape[1], p["conv_w"].shape[2]
    cr = p["pa_w1"].shape[1]
    f32 = jnp.float32

    # Banded conv weight: wrow[di, (j+dj)*Cin + ci, j*Cout + co] = w[di,dj,ci,co]
    w9 = p["conv_w"].reshape(3, 3, Cin, Cout).astype(f32)       # [di, dj, ci, co]
    shifts = jnp.stack(
        [jnp.eye(Wp + 2, Wp, k=-dj, dtype=f32) for dj in range(3)])  # [dj, p, j]
    wrow = jnp.einsum("epq,deio->dpiqo", shifts, w9)
    wrow = wrow.reshape(3, (Wp + 2) * Cin, Wp * Cout).astype(matmul_dtype)
    bp = jnp.tile(p["conv_b"], (1, Wp))                          # (1, Wp*Cout)

    # PALayer: block-diagonal per-pixel 1x1 convs; second conv (cr -> 1)
    # replicated over the pixel's Cout output lanes.
    eyeW = jnp.eye(Wp, dtype=f32)
    paw1 = jnp.einsum("pq,io->piqo", eyeW, p["pa_w1"]).reshape(Wp * Cout, Wp * cr)
    pab1 = jnp.tile(p["pa_b1"], (1, Wp))                         # (1, Wp*cr)
    paw2 = jnp.einsum("pq,io->piqo", eyeW,
                      jnp.broadcast_to(p["pa_w2"], (cr, Cout))
                      ).reshape(Wp * cr, Wp * Cout)
    pab2 = jnp.tile(p["pa_b2"], (1, Wp * Cout))                  # (1, Wp*Cout)

    # CALayer: fold 1/Wp of the global average pool into ca_w1 and replicate
    # ca_w2 / ca_b2 across the Wp packed pixels.
    caw1 = jnp.tile(p["ca_w1"], (Wp, 1)) / float(Wp)             # (Wp*Cout, cr)
    cab1 = p["ca_b1"]                                            # (1, cr)
    caw2 = jnp.tile(p["ca_w2"], (1, Wp))                         # (cr, Wp*Cout)
    cab2 = jnp.tile(p["ca_b2"], (1, Wp))                         # (1, Wp*Cout)
    return [wrow, bp, paw1, pab1, paw2, pab2, caw1, cab1, caw2, cab2]


# ---------------------------------------------------------------------------
# Generation-aware VMEM / block-batch sizing
# ---------------------------------------------------------------------------
def _tpu_vmem_capacity_bytes():
    """Per-core VMEM capacity; conservative 64 MiB fallback if undetectable."""
    try:
        info = pltpu.get_tpu_info()
        for name in ("vmem_capacity_bytes", "vmem_size_bytes", "vmem_bytes"):
            v = getattr(info, name, None)
            if v:
                return int(v)
    except Exception:
        pass
    return 64 << 20


def _vmem_plan(resident_weight_bytes):
    cap = _tpu_vmem_capacity_bytes()
    if cap <= (64 << 20):
        # v7x-class: 64 MiB physical per TensorCore -> leave headroom for
        # compiler scratch/metadata instead of requesting the whole thing.
        limit, small_vmem = 44 << 20, True
    else:
        # v5e / v6e: 128 MiB physical (scoped defaults are only 16/32 MiB).
        limit, small_vmem = 96 << 20, False
    block_budget = max(0, limit - resident_weight_bytes - (6 << 20))
    return limit, block_budget, small_vmem


def _per_image_block_bytes(Hp, Wp, Cin, Cout, in_bytes):
    lin, lout, lhalo = Wp * Cin, Wp * Cout, (Wp + 2) * Cin
    blk_in = 2 * Hp * lin * in_bytes            # double-buffered input block
    blk_out = 2 * 2 * Hp * lout * 4             # two f32 outputs, double-buffered
    halo = (Hp + 2) * lhalo * 4                 # f32 halo scratch
    temps = Hp * (3 * lhalo + 8 * lout) * 4     # rough live-temporary bound
    return blk_in + blk_out + halo + temps


def _resident_weight_bytes(Wp, Cin, Cout, cr, w_bytes):
    wrow = 3 * (Wp + 2) * Cin * Wp * Cout * w_bytes
    attn = (2 * Wp * Cout * Wp * cr + 2 * cr * Wp * Cout) * 4
    bias = (3 * Wp * Cout + Wp * cr + cr) * 4
    return 2 * (wrow + attn + bias)             # pipeline may double-buffer them


def _pick_block_batch(N, rows_per_img, per_img_bytes, block_budget,
                      prefer_two_steps):
    """Images per grid step: largest VMEM-feasible block, M-fill target ~1024
    rows, and >= 2 grid steps only when M stays >= ~256 rows (always preferred
    on v7x-class parts so the second TensorCore is not idled)."""
    cap = max(1, block_budget // max(1, per_img_bytes))          # VMEM-feasible
    cap = min(cap, max(1, -(-1024 // rows_per_img)))             # M ~ 1024 rows
    cap = min(cap, N)
    if N > 1 and cap == N:
        half = N // 2
        if prefer_two_steps or half * rows_per_img >= 256:
            cap = max(1, half)
    nb = 1
    for d in range(1, cap + 1):
        if N % d == 0:
            nb = d
    return nb


# ---------------------------------------------------------------------------
# Forward wrapper
# ---------------------------------------------------------------------------
def down_forward(x_nchw, params, *, use_bf16_matmul=True):
    """Pallas forward of Down.forward(x, None) -> (relu(y), y - relu(y))."""
    N, Cin, H, W = x_nchw.shape
    assert H % 2 == 0 and W % 2 == 0, "MaxPool2d(2) needs even spatial dims"
    Hp, Wp = H // 2, W // 2
    Cout = params["conv_b"].shape[-1]
    cr = params["pa_w1"].shape[1]
    assert Hp % 8 == 0, "pooled height must be a multiple of 8 (see TODO)"
    assert Wp * max(Cin, Cout) <= 2048, "row-packed layout targets small C/W"

    mm_dtype = jnp.bfloat16 if use_bf16_matmul else jnp.float32
    in_bytes = 2 if use_bf16_matmul else 4

    # MaxPool2d(2) BEFORE the layout transpose: transpose + kernel DMA then
    # touch the 4x-smaller pooled tensor.
    xp = jax.lax.reduce_window(x_nchw, -jnp.inf, jax.lax.max,
                               (1, 1, 2, 2), (1, 1, 2, 2), "VALID")
    # (N, Cin, Hp, Wp) -> (N, Hp, Wp*Cin): whole image rows on the lane axis.
    xr = jnp.transpose(xp, (0, 2, 3, 1)).reshape(N, Hp, Wp * Cin).astype(mm_dtype)

    weights = _pack_params(params, Wp, matmul_dtype=mm_dtype)

    wbytes = _resident_weight_bytes(Wp, Cin, Cout, cr, in_bytes)
    vmem_limit, block_budget, small_vmem = _vmem_plan(wbytes)
    Nb = _pick_block_batch(
        N, Hp, _per_image_block_bytes(Hp, Wp, Cin, Cout, in_bytes),
        block_budget, prefer_two_steps=small_vmem)

    def _full_spec(a):
        nd = a.ndim
        return pl.BlockSpec(a.shape, lambda n, _nd=nd: (0,) * _nd)

    out_sds = jax.ShapeDtypeStruct((N, Hp, Wp * Cout), jnp.float32)
    grid_spec = pltpu.PrefetchScalarGridSpec(
        num_scalar_prefetch=0,
        grid=(N // Nb,),
        in_specs=[pl.BlockSpec((Nb, Hp, Wp * Cin), lambda n: (n, 0, 0))]
                 + [_full_spec(w) for w in weights],
        out_specs=[pl.BlockSpec((Nb, Hp, Wp * Cout), lambda n: (n, 0, 0)),
                   pl.BlockSpec((Nb, Hp, Wp * Cout), lambda n: (n, 0, 0))],
        scratch_shapes=[pltpu.VMEM((Nb, Hp + 2, (Wp + 2) * Cin), jnp.float32)],
    )

    kernel = functools.partial(_down_kernel, Hp=Hp, Wp=Wp, Cin=Cin, Cout=Cout)
    out_p, res_p = pl.pallas_call(
        kernel,
        out_shape=(out_sds, out_sds),
        grid_spec=grid_spec,
        compiler_params=pltpu.CompilerParams(
            dimension_semantics=("parallel",),
            vmem_limit_bytes=vmem_limit),
    )(xr, *weights)

    def _to_nchw(o):
        return jnp.transpose(o.reshape(N, Hp, Wp, Cout), (0, 3, 1, 2))

    return _to_nchw(out_p), _to_nchw(res_p)


# ---------------------------------------------------------------------------
# Parameters / plain-JAX reference
# ---------------------------------------------------------------------------
def init_params(key, cin, cout):
    """Deterministic synthetic parameters (shapes follow Down.__init__)."""
    cr = cout // 8
    ks = jax.random.split(key, 10)
    sc = 0.1
    return {
        # conv_w[k, ci, co] == torch_conv.weight[co, ci, k//3, k%3]
        "conv_w": sc * jax.random.normal(ks[0], (9, cin, cout), jnp.float32),
        "conv_b": sc * jax.random.normal(ks[1], (1, cout), jnp.float32),
        "pa_w1": sc * jax.random.normal(ks[2], (cout, cr), jnp.float32),
        "pa_b1": sc * jax.random.normal(ks[3], (1, cr), jnp.float32),
        "pa_w2": sc * jax.random.normal(ks[4], (cr, 1), jnp.float32),
        "pa_b2": sc * jax.random.normal(ks[5], (1, 1), jnp.float32),
        "ca_w1": sc * jax.random.normal(ks[6], (cout, cr), jnp.float32),
        "ca_b1": sc * jax.random.normal(ks[7], (1, cr), jnp.float32),
        "ca_w2": sc * jax.random.normal(ks[8], (cr, cout), jnp.float32),
        "ca_b2": sc * jax.random.normal(ks[9], (1, cout), jnp.float32),
    }


def down_forward_ref(x, p):
    """Plain-JAX reference (mirrors the PyTorch module) for validation."""
    N, Cin, H, W = x.shape
    Cout = p["conv_b"].shape[-1]
    xp = jax.lax.reduce_window(x, -jnp.inf, jax.lax.max,
                               (1, 1, 2, 2), (1, 1, 2, 2), "VALID")
    w = p["conv_w"].reshape(3, 3, Cin, Cout).transpose(3, 2, 0, 1)   # OIHW
    y = jax.lax.conv_general_dilated(
        xp, w, (1, 1), ((1, 1), (1, 1)),
        dimension_numbers=("NCHW", "OIHW", "NCHW"))
    y = y + p["conv_b"].reshape(1, Cout, 1, 1)
    t = jax.nn.relu(jnp.einsum("nchw,cd->ndhw", y, p["pa_w1"])
                    + p["pa_b1"].reshape(1, -1, 1, 1))
    s = jax.nn.sigmoid(jnp.einsum("ndhw,de->nehw", t, p["pa_w2"])
                       + p["pa_b2"].reshape(1, 1, 1, 1))
    y = y * s
    g = jnp.mean(y, axis=(2, 3), keepdims=True)
    t2 = jax.nn.relu(jnp.einsum("nchw,cd->ndhw", g, p["ca_w1"])
                     + p["ca_b1"].reshape(1, -1, 1, 1))
    s2 = jax.nn.sigmoid(jnp.einsum("ndhw,de->nehw", t2, p["ca_w2"])
                        + p["ca_b2"].reshape(1, -1, 1, 1))
    y = y * s2
    out = jax.nn.relu(y)
    return out, y - out


if __name__ == "__main__":
    key = jax.random.PRNGKey(0)
    kx, kp = jax.random.split(key)
    # in_channels = out_channels = 16 so channel // 8 = 2 (valid attention width)
    N, C, H, W = 2, 16, 16, 16
    x = jax.random.normal(kx, (N, C, H, W), jnp.float32)
    params = init_params(kp, C, C)

    out_ref, res_ref = down_forward_ref(x, params)

    # f32 MXU path: tight check against the plain-JAX reference.
    out32, res32 = jax.block_until_ready(
        down_forward(x, params, use_bf16_matmul=False))
    assert jnp.allclose(out32, out_ref, atol=1e-4, rtol=1e-4), "relu mismatch (f32)"
    assert jnp.allclose(res32, res_ref, atol=1e-4, rtol=1e-4), "residual mismatch (f32)"

    # Default path: bf16 MXU operands with f32 accumulation (looser tolerance).
    out, res = jax.block_until_ready(down_forward(x, params))
    assert jnp.allclose(out, out_ref, atol=5e-2, rtol=5e-2), "relu mismatch (bf16)"
    assert jnp.allclose(res, res_ref, atol=5e-2, rtol=5e-2), "residual mismatch (bf16)"

    print("KERNEL_OK")
</pallas_src>

<mosaic_0001>
module attributes {stable_mosaic.version = 11 : i64} {
  func.func @_down_kernel(%arg0: i32, %arg1: memref<1x8x128xf32, #tpu.memory_space<vmem>>, %arg2: memref<3x160x128xf32, #tpu.memory_space<vmem>>, %arg3: memref<1x128xf32, #tpu.memory_space<vmem>>, %arg4: memref<128x16xf32, #tpu.memory_space<vmem>>, %arg5: memref<1x16xf32, #tpu.memory_space<vmem>>, %arg6: memref<16x128xf32, #tpu.memory_space<vmem>>, %arg7: memref<1x128xf32, #tpu.memory_space<vmem>>, %arg8: memref<128x2xf32, #tpu.memory_space<vmem>>, %arg9: memref<1x2xf32, #tpu.memory_space<vmem>>, %arg10: memref<2x128xf32, #tpu.memory_space<vmem>>, %arg11: memref<1x128xf32, #tpu.memory_space<vmem>>, %arg12: memref<1x8x128xf32, #tpu.memory_space<vmem>>, %arg13: memref<1x8x128xf32, #tpu.memory_space<vmem>>, %arg14: memref<1x10x160xf32, #tpu.memory_space<vmem>>) attributes {dimension_semantics = [#tpu.dimension_semantics<parallel>], iteration_bounds = array<i64: 2>, scalar_prefetch = 0 : i64, scratch_operands = 1 : i64, tpu.core_type = #tpu.core_type<tc>, window_params = [{transform_indices = @transform_0, window_bounds = array<i64: 1, 8, 128>}, {pipeline_mode = #tpu.pipeline_mode<synchronous>, transform_indices = @transform_1, window_bounds = array<i64: 3, 160, 128>}, {pipeline_mode = #tpu.pipeline_mode<synchronous>, transform_indices = @transform_2, window_bounds = array<i64: 1, 128>}, {pipeline_mode = #tpu.pipeline_mode<synchronous>, transform_indices = @transform_3, window_bounds = array<i64: 128, 16>}, {pipeline_mode = #tpu.pipeline_mode<synchronous>, transform_indices = @transform_4, window_bounds = array<i64: 1, 16>}, {pipeline_mode = #tpu.pipeline_mode<synchronous>, transform_indices = @transform_5, window_bounds = array<i64: 16, 128>}, {pipeline_mode = #tpu.pipeline_mode<synchronous>, transform_indices = @transform_6, window_bounds = array<i64: 1, 128>}, {pipeline_mode = #tpu.pipeline_mode<synchronous>, transform_indices = @transform_7, window_bounds = array<i64: 128, 2>}, {pipeline_mode = #tpu.pipeline_mode<synchronous>, transform_indices = @transform_8, window_bounds = array<i64: 1, 2>}, {pipeline_mode = #tpu.pipeline_mode<synchronous>, transform_indices = @transform_9, window_bounds = array<i64: 2, 128>}, {pipeline_mode = #tpu.pipeline_mode<synchronous>, transform_indices = @transform_10, window_bounds = array<i64: 1, 128>}, {transform_indices = @transform_11, window_bounds = array<i64: 1, 8, 128>}, {transform_indices = @transform_12, window_bounds = array<i64: 1, 8, 128>}]} {
    %cst = arith.constant 0.000000e+00 : f32
    %0 = vector.broadcast %cst : f32 to vector<1x10x160xf32>
    %c0 = arith.constant 0 : index
    %c0_0 = arith.constant 0 : index
    %c0_1 = arith.constant 0 : index
    %1 = vector.load %arg14[%c0, %c0_0, %c0_1] : memref<1x10x160xf32, #tpu.memory_space<vmem>>, vector<1x10x160xf32>
    tpu.vector_store %arg14[%c0, %c0_0, %c0_1], %0 {strides = array<i32>} : memref<1x10x160xf32, #tpu.memory_space<vmem>>, vector<1x10x160xf32>,
    %c0_2 = arith.constant 0 : index
    %c0_3 = arith.constant 0 : index
    %c0_4 = arith.constant 0 : index
    %2 = vector.load %arg1[%c0_2, %c0_3, %c0_4] : memref<1x8x128xf32, #tpu.memory_space<vmem>>, vector<1x8x128xf32>
    %c0_5 = arith.constant 0 : index
    %c1 = arith.constant 1 : index
    %c16 = arith.constant 16 : index
    %3 = vector.load %arg14[%c0_5, %c1, %c16] : memref<1x10x160xf32, #tpu.memory_space<vmem>>, vector<1x8x128xf32>
    tpu.vector_store %arg14[%c0_5, %c1, %c16], %2 {strides = array<i32>} : memref<1x10x160xf32, #tpu.memory_space<vmem>>, vector<1x8x128xf32>,
    %c0_6 = arith.constant 0 : index
    %c0_7 = arith.constant 0 : index
    %c0_8 = arith.constant 0 : index
    %4 = vector.load %arg14[%c0_6, %c0_7, %c0_8] : memref<1x10x160xf32, #tpu.memory_space<vmem>>, vector<1x8x160xf32>
    %5 = vector.shape_cast %4 : vector<1x8x160xf32> to vector<8x160xf32>
    %c0_9 = arith.constant 0 : index
    %c0_10 = arith.constant 0 : index
    %c0_11 = arith.constant 0 : index
    %6 = vector.load %arg2[%c0_9, %c0_10, %c0_11] : memref<3x160x128xf32, #tpu.memory_space<vmem>>, vector<1x160x128xf32>
    %7 = vector.shape_cast %6 : vector<1x160x128xf32> to vector<160x128xf32>
    %cst_12 = arith.constant dense<0.000000e+00> : vector<8x128xf32>
    %8 = tpu.matmul %5, %7, %cst_12 {dimension_numbers = #tpu.dot_dimension_numbers<[1], [0], [0], [1], [0, 0, 1, 1], [], []>} : vector<8x160xf32>, vector<160x128xf32>, vector<8x128xf32> -> vector<8x128xf32>
    %c0_13 = arith.constant 0 : index
    %c1_14 = arith.constant 1 : index
    %c0_15 = arith.constant 0 : index
    %9 = vector.load %arg14[%c0_13, %c1_14, %c0_15] : memref<1x10x160xf32, #tpu.memory_space<vmem>>, vector<1x8x160xf32>
    %10 = vector.shape_cast %9 : vector<1x8x160xf32> to vector<8x160xf32>
    %c1_16 = arith.constant 1 : index
    %c0_17 = arith.constant 0 : index
    %c0_18 = arith.constant 0 : index
    %11 = vector.load %arg2[%c1_16, %c0_17, %c0_18] : memref<3x160x128xf32, #tpu.memory_space<vmem>>, vector<1x160x128xf32>
    %12 = vector.shape_cast %11 : vector<1x160x128xf32> to vector<160x128xf32>
    %cst_19 = arith.constant dense<0.000000e+00> : vector<8x128xf32>
    %13 = tpu.matmul %10, %12, %cst_19 {dimension_numbers = #tpu.dot_dimension_numbers<[1], [0], [0], [1], [0, 0, 1, 1], [], []>} : vector<8x160xf32>, vector<160x128xf32>, vector<8x128xf32> -> vector<8x128xf32>
    %14 = arith.addf %8, %13 : vector<8x128xf32>
    %c0_20 = arith.constant 0 : index
    %c2 = arith.constant 2 : index
    %c0_21 = arith.constant 0 : index
    %15 = vector.load %arg14[%c0_20, %c2, %c0_21] : memref<1x10x160xf32, #tpu.memory_space<vmem>>, vector<1x8x160xf32>
    %16 = vector.shape_cast %15 : vector<1x8x160xf32> to vector<8x160xf32>
    %c2_22 = arith.constant 2 : index
    %c0_23 = arith.constant 0 : index
    %c0_24 = arith.constant 0 : index
    %17 = vector.load %arg2[%c2_22, %c0_23, %c0_24] : memref<3x160x128xf32, #tpu.memory_space<vmem>>, vector<1x160x128xf32>
    %18 = vector.shape_cast %17 : vector<1x160x128xf32> to vector<160x128xf32>
    %cst_25 = arith.constant dense<0.000000e+00> : vector<8x128xf32>
    %19 = tpu.matmul %16, %18, %cst_25 {dimension_numbers = #tpu.dot_dimension_numbers<[1], [0], [0], [1], [0, 0, 1, 1], [], []>} : vector<8x160xf32>, vector<160x128xf32>, vector<8x128xf32> -> vector<8x128xf32>
    %20 = arith.addf %14, %19 : vector<8x128xf32>
    %c0_26 = arith.constant 0 : index
    %c0_27 = arith.constant 0 : index
    %21 = vector.load %arg3[%c0_26, %c0_27] : memref<1x128xf32, #tpu.memory_space<vmem>>, vector<1x128xf32>
    %22 = vector.broadcast %21 : vector<1x128xf32> to vector<8x128xf32>
    %23 = arith.addf %20, %22 : vector<8x128xf32>
    %c0_28 = arith.constant 0 : index
    %c0_29 = arith.constant 0 : index
    %24 = vector.load %arg4[%c0_28, %c0_29] : memref<128x16xf32, #tpu.memory_space<vmem>>, vector<128x16xf32>
    %cst_30 = arith.constant dense<0.000000e+00> : vector<8x16xf32>
    %25 = tpu.matmul %23, %24, %cst_30 {dimension_numbers = #tpu.dot_dimension_numbers<[1], [0], [0], [1], [0, 0, 1, 1], [], []>} : vector<8x128xf32>, vector<128x16xf32>, vector<8x16xf32> -> vector<8x16xf32>
    %c0_31 = arith.constant 0 : index
    %c0_32 = arith.constant 0 : index
    %26 = vector.load %arg5[%c0_31, %c0_32] : memref<1x16xf32, #tpu.memory_space<vmem>>, vector<1x16xf32>
    %27 = vector.broadcast %26 : vector<1x16xf32> to vector<8x16xf32>
    %28 = arith.addf %25, %27 : vector<8x16xf32>
    %cst_33 = arith.constant 0.000000e+00 : f32
    %29 = vector.broadcast %cst_33 : f32 to vector<8x16xf32>
    %30 = arith.maximumf %28, %29 : vector<8x16xf32>
    %c0_34 = arith.constant 0 : index
    %c0_35 = arith.constant 0 : index
    %31 = vector.load %arg6[%c0_34, %c0_35] : memref<16x128xf32, #tpu.memory_space<vmem>>, vector<16x128xf32>
    %cst_36 = arith.constant dense<0.000000e+00> : vector<8x128xf32>
    %32 = tpu.matmul %30, %31, %cst_36 {dimension_numbers = #tpu.dot_dimension_numbers<[1], [0], [0], [1], [0, 0, 1, 1], [], []>} : vector<8x16xf32>, vector<16x128xf32>, vector<8x128xf32> -> vector<8x128xf32>
    %c0_37 = arith.constant 0 : index
    %c0_38 = arith.constant 0 : index
    %33 = vector.load %arg7[%c0_37, %c0_38] : memref<1x128xf32, #tpu.memory_space<vmem>>, vector<1x128xf32>
    %34 = vector.broadcast %33 : vector<1x128xf32> to vector<8x128xf32>
    %35 = arith.addf %32, %34 : vector<8x128xf32>
    %36 = arith.negf %35 : vector<8x128xf32>
    %37 = math.exp %36 : vector<8x128xf32>
    %cst_39 = arith.constant 1.000000e+00 : f32
    %38 = vector.broadcast %cst_39 : f32 to vector<8x128xf32>
    %39 = arith.addf %38, %37 : vector<8x128xf32>
    %40 = arith.divf %38, %39 : vector<8x128xf32>
    %41 = arith.mulf %23, %40 : vector<8x128xf32>
    %42 = vector.shape_cast %41 : vector<8x128xf32> to vector<1x8x128xf32>
    %cst_40 = arith.constant dense<0.000000e+00> : vector<1x128xf32>
    %43 = vector.multi_reduction <add>, %42, %cst_40 [1] : vector<1x8x128xf32> to vector<1x128xf32>
    %cst_41 = arith.constant 8.000000e+00 : f32
    %44 = vector.broadcast %cst_41 : f32 to vector<1x128xf32>
    %45 = arith.divf %43, %44 : vector<1x128xf32>
    %c0_42 = arith.constant 0 : index
    %c0_43 = arith.constant 0 : index
    %46 = vector.load %arg8[%c0_42, %c0_43] : memref<128x2xf32, #tpu.memory_space<vmem>>, vector<128x2xf32>
    %cst_44 = arith.constant dense<0.000000e+00> : vector<1x2xf32>
    %47 = tpu.matmul %45, %46, %cst_44 {dimension_numbers = #tpu.dot_dimension_numbers<[1], [0], [0], [1], [0, 0, 1, 1], [], []>} : vector<1x128xf32>, vector<128x2xf32>, vector<1x2xf32> -> vector<1x2xf32>
    %c0_45 = arith.constant 0 : index
    %c0_46 = arith.constant 0 : index
    %48 = vector.load %arg9[%c0_45, %c0_46] : memref<1x2xf32, #tpu.memory_space<vmem>>, vector<1x2xf32>
    %49 = arith.addf %47, %48 : vector<1x2xf32>
    %cst_47 = arith.constant 0.000000e+00 : f32
    %50 = vector.broadcast %cst_47 : f32 to vector<1x2xf32>
    %51 = arith.maximumf %49, %50 : vector<1x2xf32>
    %c0_48 = arith.constant 0 : index
    %c0_49 = arith.constant 0 : index
    %52 = vector.load %arg10[%c0_48, %c0_49] : memref<2x128xf32, #tpu.memory_space<vmem>>, vector<2x128xf32>
    %cst_50 = arith.constant dense<0.000000e+00> : vector<1x128xf32>
    %53 = tpu.matmul %51, %52, %cst_50 {dimension_numbers = #tpu.dot_dimension_numbers<[1], [0], [0], [1], [0, 0, 1, 1], [], []>} : vector<1x2xf32>, vector<2x128xf32>, vector<1x128xf32> -> vector<1x128xf32>
    %c0_51 = arith.constant 0 : index
    %c0_52 = arith.constant 0 : index
    %54 = vector.load %arg11[%c0_51, %c0_52] : memref<1x128xf32, #tpu.memory_space<vmem>>, vector<1x128xf32>
    %55 = arith.addf %53, %54 : vector<1x128xf32>
    %56 = arith.negf %55 : vector<1x128xf32>
    %57 = math.exp %56 : vector<1x128xf32>
    %cst_53 = arith.constant 1.000000e+00 : f32
    %58 = vector.broadcast %cst_53 : f32 to vector<1x128xf32>
    %59 = arith.addf %58, %57 : vector<1x128xf32>
    %60 = arith.divf %58, %59 : vector<1x128xf32>
    %61 = vector.shape_cast %60 : vector<1x128xf32> to vector<1x1x128xf32>
    %62 = vector.broadcast %61 : vector<1x1x128xf32> to vector<1x8x128xf32>
    %63 = arith.mulf %42, %62 : vector<1x8x128xf32>
    %cst_54 = arith.constant 0.000000e+00 : f32
    %64 = vector.broadcast %cst_54 : f32 to vector<1x8x128xf32>
    %65 = arith.maximumf %63, %64 : vector<1x8x128xf32>
    %c0_55 = arith.constant 0 : index
    %c0_56 = arith.constant 0 : index
    %c0_57 = arith.constant 0 : index
    %66 = vector.load %arg12[%c0_55, %c0_56, %c0_57] : memref<1x8x128xf32, #tpu.memory_space<vmem>>, vector<1x8x128xf32>
    tpu.vector_store %arg12[%c0_55, %c0_56, %c0_57], %65 {strides = array<i32>} : memref<1x8x128xf32, #tpu.memory_space<vmem>>, vector<1x8x128xf32>,
    %cst_58 = arith.constant 0.000000e+00 : f32
    %67 = vector.broadcast %cst_58 : f32 to vector<1x8x128xf32>
    %68 = arith.minimumf %63, %67 : vector<1x8x128xf32>
    %c0_59 = arith.constant 0 : index
    %c0_60 = arith.constant 0 : index
    %c0_61 = arith.constant 0 : index
    %69 = vector.load %arg13[%c0_59, %c0_60, %c0_61] : memref<1x8x128xf32, #tpu.memory_space<vmem>>, vector<1x8x128xf32>
    tpu.vector_store %arg13[%c0_59, %c0_60, %c0_61], %68 {strides = array<i32>} : memref<1x8x128xf32, #tpu.memory_space<vmem>>, vector<1x8x128xf32>,
    return
  }
  func.func @transform_0(%arg0: i32) -> (i32, i32, i32) {
    %c0_i32 = arith.constant 0 : i32
    %c0_i32_0 = arith.constant 0 : i32
    %c0_i32_1 = arith.constant 0 : i32
    return %arg0, %c0_i32, %c0_i32_0 : i32, i32, i32
  }
  func.func @transform_1(%arg0: i32) -> (i32, i32, i32) {
    %c0_i32 = arith.constant 0 : i32
    %c0_i32_0 = arith.constant 0 : i32
    %c0_i32_1 = arith.constant 0 : i32
    %c0_i32_2 = arith.constant 0 : i32
    return %c0_i32, %c0_i32_0, %c0_i32_1 : i32, i32, i32
  }
  func.func @transform_2(%arg0: i32) -> (i32, i32) {
    %c0_i32 = arith.constant 0 : i32
    %c0_i32_0 = arith.constant 0 : i32
    %c0_i32_1 = arith.constant 0 : i32
    return %c0_i32, %c0_i32_0 : i32, i32
  }
  func.func @transform_3(%arg0: i32) -> (i32, i32) {
    %c0_i32 = arith.constant 0 : i32
    %c0_i32_0 = arith.constant 0 : i32
    %c0_i32_1 = arith.constant 0 : i32
    return %c0_i32, %c0_i32_0 : i32, i32
  }
  func.func @transform_4(%arg0: i32) -> (i32, i32) {
    %c0_i32 = arith.constant 0 : i32
    %c0_i32_0 = arith.constant 0 : i32
    %c0_i32_1 = arith.constant 0 : i32
    return %c0_i32, %c0_i32_0 : i32, i32
  }
  func.func @transform_5(%arg0: i32) -> (i32, i32) {
    %c0_i32 = arith.constant 0 : i32
    %c0_i32_0 = arith.constant 0 : i32
    %c0_i32_1 = arith.constant 0 : i32
    return %c0_i32, %c0_i32_0 : i32, i32
  }
  func.func @transform_6(%arg0: i32) -> (i32, i32) {
    %c0_i32 = arith.constant 0 : i32
    %c0_i32_0 = arith.constant 0 : i32
    %c0_i32_1 = arith.constant 0 : i32
    return %c0_i32, %c0_i32_0 : i32, i32
  }
  func.func @transform_7(%arg0: i32) -> (i32, i32) {
    %c0_i32 = arith.constant 0 : i32
    %c0_i32_0 = arith.constant 0 : i32
    %c0_i32_1 = arith.constant 0 : i32
    return %c0_i32, %c0_i32_0 : i32, i32
  }
  func.func @transform_8(%arg0: i32) -> (i32, i32) {
    %c0_i32 = arith.constant 0 : i32
    %c0_i32_0 = arith.constant 0 : i32
    %c0_i32_1 = arith.constant 0 : i32
    return %c0_i32, %c0_i32_0 : i32, i32
  }
  func.func @transform_9(%arg0: i32) -> (i32, i32) {
    %c0_i32 = arith.constant 0 : i32
    %c0_i32_0 = arith.constant 0 : i32
    %c0_i32_1 = arith.constant 0 : i32
    return %c0_i32, %c0_i32_0 : i32, i32
  }
  func.func @transform_10(%arg0: i32) -> (i32, i32) {
    %c0_i32 = arith.constant 0 : i32
    %c0_i32_0 = arith.constant 0 : i32
    %c0_i32_1 = arith.constant 0 : i32
    return %c0_i32, %c0_i32_0 : i32, i32
  }
  func.func @transform_11(%arg0: i32) -> (i32, i32, i32) {
    %c0_i32 = arith.constant 0 : i32
    %c0_i32_0 = arith.constant 0 : i32
    %c0_i32_1 = arith.constant 0 : i32
    return %arg0, %c0_i32, %c0_i32_0 : i32, i32, i32
  }
  func.func @transform_12(%arg0: i32) -> (i32, i32, i32) {
    %c0_i32 = arith.constant 0 : i32
    %c0_i32_0 = arith.constant 0 : i32
    %c0_i32_1 = arith.constant 0 : i32
    return %arg0, %c0_i32, %c0_i32_0 : i32, i32, i32
  }
}

</mosaic_0001>

<bundles_post_ra>
// kernel: tpu_custom_call.1
= control target key start
LH: loop header
LB: loop body
LE: loop exit
PB: predicated region body
PF: predicated region fallthrough
CT: control target
= control target key end

     0   :  { %s2085_s0 = inlined_call_operand.vmem [shape: f32[2,8,128], index: 0, kind: input, shape index: {}]   ;;  %s2086_s1 = inlined_call_operand.hbm [shape: f32[3,160,128], index: 1, kind: input, shape index: {}]   ;;  %s2087_s2 = inlined_call_operand.vmem [shape: f32[1,128], index: 2, kind: input, shape index: {}]   ;;  %s2088_s3 = inlined_call_operand.vmem [shape: f32[128,16], index: 3, kind: input, shape index: {}]   ;;  %s2089_s4 = inlined_call_operand.vmem [shape: f32[1,16], index: 4, kind: input, shape index: {}]   ;;  %s2090_s5 = inlined_call_operand.vmem [shape: f32[16,128], index: 5, kind: input, shape index: {}]   ;;  %s2091_s6 = inlined_call_operand.vmem [shape: f32[1,128], index: 6, kind: input, shape index: {}]   ;;  %s2092_s7 = inlined_call_operand.vmem [shape: f32[128,2], index: 7, kind: input, shape index: {}]   ;;  %s2093_s8 = inlined_call_operand.vmem [shape: f32[1,2], index: 8, kind: input, shape index: {}]   ;;  %s2094_s9 = inlined_call_operand.vmem [shape: f32[2,128], index: 9, kind: input, shape index: {}]   ;;  %s2095_s10 = inlined_call_operand.vmem [shape: f32[1,128], index: 10, kind: input, shape index: {}]   ;;  %s2096_s11 = inlined_call_operand.hbm [shape: f32[2,8,128], index: 11, kind: output, shape index: {0}]   ;;  %s2097_s12 = inlined_call_operand.hbm [shape: f32[2,8,128], index: 12, kind: output, shape index: {1}]  }
   0x1   :  { %2098 = sst [smem:[#allocation12_spill]] %s2085_s0 }
   0x2   :  { %2099 = sst [smem:[#allocation13_spill]] %s2086_s1 }
   0x3   :  { %2100 = sst [smem:[#allocation14_spill]] %s2087_s2 }
   0x4   :  { %2101 = sst [smem:[#allocation15_spill]] %s2088_s3 }
   0x5   :  { %2102 = sst [smem:[#allocation16_spill]] %s2089_s4 }
   0x6   :  { %18 = vsyncpa [#allocation4], 0 }
   0x7   :  { %19 = vsyncpa [#allocation5], 0 }
   0x8   :  { %21 = vsyncpa [#allocation5 + $0x1], 0 }
   0x9   :  { %22 = vsyncpa [#allocation8], 0 }
   0xa   :  { %24 = vsyncpa [#allocation8 + $0x1], 0  ;;  %s1697_s21 = smov 0   ;;  %s1699_s22 = smov 0  }
   0xb   :  { %s1701_s23 = smov 0   ;;  %s1703_s24 = smov 0  }
   0xc LB: > { %s1718_s25 = sadd.s32 4294967295, %s1622_s24   ;;  %s1287_s26 = sadd.s32 4294967294, %s1622_s24   ;;  %s1622_s24 = sphi %s1703_s24, %s2115_s24   ;;  %s1618_s23 = sphi %s1701_s23, %s2114_s23   ;;  %s1614_s22 = sphi %s1699_s22, %s2113_s22   ;;  %s1610_s21 = sphi %s1697_s21, %s2112_s21  }
   0xd   : > { %s1722_s27 = sadd.s32 1, %s1622_s24   ;;  %s273_s28 = sadd.s32 1, %s1618_s23 }
   0xe   : > { %s270_s29 = ssub.s32 %s1622_s24, %s1722_s27  ;;  %p283_p0 = scmp.ne.s32.totalorder %s1618_s23, %s1614_s22 }
   0xf   : > { %p271_p1 = scmp.eq.s32.totalorder %s270_s29, 0  ;;  %p284_p2 = scmp.eq.s32.totalorder %s1718_s25, 1 }
  0x10   : > { %p289_p3 = scmp.ne.s32.totalorder %s1614_s22, %s1610_s21  ;;  %p290_p4 = scmp.eq.s32.totalorder %s1287_s26, 1 }
  0x11   : > { %s1733_s30 = scalar_select %p271_p1, %s1618_s23, %s273_s28  }
  0x12   : > { %p1735_p5 = por %p284_p2, %p283_p0  ;;  %p1739_p6 = por %p290_p4, %p289_p3 }
  0x13   : > { %p1288_p7 = scmp.ge.s32.totalorder %s1622_s24, 1  ;;  %p323_p8 = scmp.lt.s32.totalorder %s1622_s24, 3 }
  0x14   : > { %s2104_s14 = scalar_select %p1739_p6, 1, 0 }
  0x15   : > { %p1453_p9 = scmp.eq.s32.totalorder %s1718_s25, 0  ;;  %p1746_p10 = pnand %p1288_p7, %p323_p8 }
  0x16   : > { %s1624_s16 = smov [#allocation3]  }
  0x17   : > { %s335_s17 = sshll.u32 %s1624_s16, 4  ;;  %p1442_p11 = pneg %p1746_p10  ;;  %s336_s17 = int_to_ptr.vmem [resolvable:$true] %s335_s17 }
  0x18   : > { %s1513_s18 = scalar_lea.vmem %s336_s17, 7680  ;;  %p1521_p3 = scmp.lt.s32.totalorder %s336_s17, %s336_s17 }
  0x19   : > { %p1443_p12 = pnand %p1453_p9, %p1442_p11  ;;  %p1514_p0 = scmp.ne.s32.totalorder %s336_s17, %s1513_s18 }
  0x1a   : > { %p1522_p4 = scmp.lt.s32.totalorder %s1513_s18, %s1513_s18 }
  0x1b   : > { %p1504_p13 = pneg %p1443_p12 }
  0x1c   : > { %p1523_p6 = por %p1522_p4, %p1521_p3 }
  0x1d   : > { %p1516_p1 = pnand %p1514_p0, %p1504_p13 }
  0x1f   : > { %p1517_p2 = pneg %p1516_p1 }
  0x21   : > { %p1524_p7 = pnand %p1523_p6, %p1517_p2 }
  0x23   : > { %1527 = shalt.err (!%p1524_p7)
}
  0x24   : > { %s1625_s19 = smov 128   ;;  %s1626_s20 = smov 8  }
  0x25   : > { %s2106_s1 = sld [smem:[#allocation13_spill]] }
  0x27   : > { %385 = sbr.rel (%p1746_p10) target bundleno = 1328 (0x530), region = 64 }
  0x2b   : > { %1445 = dma.hbm_to_vmem [thread:$0]  (!%p1443_p12), %s2106_s1, 7680, %s336_s17, [#allocation4], %s1625_s19, %s1625_s19, %s1626_s20  }
  0x2c   : > { %1597 = dma.done.wait (%p1453_p9), [#allocation4], 7680  }
  0x2d   : > { %1599 = vsyncadd (%p1453_p9), [#allocation4], 4294959616  ;;  %p431_p8 = scmp.lt.s32.totalorder %s1718_s25, 1  ;;  %vm436_vm0 = vcmask 261120   ;;  %v1627_v0 = vmov 0.0   ;;  %vm439_vm1 = vcmask 254976  }
  0x2e   : > { %589 = vmatprep.subr.mxu1 %v1627_v0  ;;  %435 = vst [vmem:[#allocation2] sm:$0xff] %v1627_v0  ;;  %438 = vst [vmem:[#allocation2 + $0x10] sm:$0x3] %v1627_v0  ;;  %516 = vmatprep.subr.mxu0 %v1627_v0  ;;  %s2107_s0 = sld [smem:[#allocation12_spill]]  ;;  %v472_v2 = vld [vmem:[#allocation3 + $0x78] sm:$0xff]  ;;  %v471_v5 = vld [vmem:[#allocation3 + $0x70] sm:$0xff] }
  0x2f   : > { %437 = vst.msk [vmem:[#allocation2 + $0x8] sm:$0xff] %vm436_vm0, %v1627_v0  ;;  %s432_s29 = scalar_select %p431_p8, %s1718_s25, 1  ;;  %v497_v3 = vld [vmem:[#allocation3 + $0x118] sm:$0xff]  ;;  %590 = vmatpush1.msra.mxu1 %v472_v2  ;;  %v496_v6 = vld [vmem:[#allocation3 + $0x110] sm:$0xff]  ;;  %v470_v7 = vld [vmem:[#allocation3 + $0x68] sm:$0xff]  ;;  %vm447_vm2 = vcmask 1047681  }
  0x30   : > { %440 = vst.msk [vmem:[#allocation2 + $0x18] sm:$0x3] %vm439_vm1, %v1627_v0  ;;  %517 = vmatpush1.msra.mxu0 %v497_v3  ;;  %591 = vmatprep.subr.mxu1 %v1627_v0  ;;  %s1628_s19 = smov 16   ;;  %v495_v8 = vld [vmem:[#allocation3 + $0x108] sm:$0xff]  ;;  %v469_v9 = vld [vmem:[#allocation3 + $0x60] sm:$0xff]  ;;  %v468_v11 = vld [vmem:[#allocation3 + $0x58] sm:$0xff] }
  0x31   : > { %s1295_s15 = sshll.u32 %s432_s29, 3  ;;  %518 = vmatprep.subr.mxu0 %v1627_v0  ;;  %592 = vmatpush1.msra.mxu1 %v471_v5  ;;  %v494_v10 = vld [vmem:[#allocation3 + $0x100] sm:$0xff]  ;;  %v493_v12 = vld [vmem:[#allocation3 + $0xf8] sm:$0xff]  ;;  %v467_v13 = vld [vmem:[#allocation3 + $0x50] sm:$0xff]  ;;  %vm449_vm3 = vcmask 130049   ;;  %vm451_vm4 = vcmask 1040512  }
  0x32   : > { %593 = vmatprep.subr.mxu1 %v1627_v0  ;;  %519 = vmatpush1.msra.mxu0 %v496_v6  ;;  %v492_v14 = vld [vmem:[#allocation3 + $0xf0] sm:$0xff]  ;;  %v466_v15 = vld [vmem:[#allocation3 + $0x48] sm:$0xff]  ;;  %v465_v17 = vld [vmem:[#allocation3 + $0x40] sm:$0xff]  ;;  %vm453_vm5 = vcmask 122880   ;;  %vm506_vm6 = vcmask 1046528   ;;  %vm688_vm7 = vcmask 1045504  }
  0x33   : > { %594 = vmatpush1.msra.mxu1 %v470_v7  ;;  %520 = vmatprep.subr.mxu0 %v1627_v0  ;;  %v491_v16 = vld [vmem:[#allocation3 + $0xe8] sm:$0xff]  ;;  %v490_v18 = vld [vmem:[#allocation3 + $0xe0] sm:$0xff]  ;;  %v464_v19 = vld [vmem:[#allocation3 + $0x38] sm:$0xff]  ;;  %s2108_s3 = sld [smem:[#allocation15_spill]]  ;;  %vm1629_vm8 = vmmov 0   ;;  %vm880_vm9 = vcmask 130048  }
  0x34   : > { %s434_s18 = scalar_lea.vmem %s2107_s0, %s1295_s15  ;;  %595 = vmatprep.subr.mxu1 %v1627_v0  ;;  %521 = vmatpush1.msra.mxu0 %v495_v8  ;;  %v489_v20 = vld [vmem:[#allocation3 + $0xd8] sm:$0xff]  ;;  %v463_v21 = vld [vmem:[#allocation3 + $0x30] sm:$0xff]  ;;  %v462_v23 = vld [vmem:[#allocation3 + $0x28] sm:$0xff]  ;;  %s2109_s2 = sld [smem:[#allocation14_spill]]  ;;  %vm1063_vm10 = vcmask 1041408   ;;  %vm1059_vm11 = vcmask 15360  }
  0x35   : > { %v441_v1 = vld [vmem:[%s434_s18] sm:$0xff]  ;;  %596 = vmatpush1.msra.mxu1 %v469_v9  ;;  %522 = vmatprep.subr.mxu0 %v1627_v0  ;;  %v488_v22 = vld [vmem:[#allocation3 + $0xd0] sm:$0xff]  ;;  %v487_v24 = vld [vmem:[#allocation3 + $0xc8] sm:$0xff]  ;;  %s2110_s4 = sld [smem:[#allocation16_spill]]  ;;  %s1309_s26 = sshll.u32 %s1718_s25, 7 }
  0x36   : > { %v443_v4 = vrot.slane %v441_v1, 7  ;;  %597 = vmatprep.subr.mxu1 %v1627_v0  ;;  %523 = vmatpush1.msra.mxu0 %v494_v10  ;;  %v461_v25 = vld [vmem:[#allocation3 + $0x20] sm:$0xff]  ;;  %v460_v27 = vld [vmem:[#allocation3 + $0x18] sm:$0xff]  ;;  %v459_v29 = vld [vmem:[#allocation3 + $0x10] sm:$0xff]  ;;  %s2015_s0 = scalar_lea.hbm %s2096_s11, %s1309_s26  ;;  %s1630_s18 = smov [#allocation6]  }
  0x37   : > { %598 = vmatpush1.msra.mxu1 %v468_v11  ;;  %524 = vmatprep.subr.mxu0 %v1627_v0  ;;  %v486_v26 = vld [vmem:[#allocation3 + $0xc0] sm:$0xff]  ;;  %v485_v28 = vld [vmem:[#allocation3 + $0xb8] sm:$0xff]  ;;  %v484_v30 = vld [vmem:[#allocation3 + $0xb0] sm:$0xff] }
  0x38   : > { %444 = vrot.lane.b32.xlu0 %v443_v4, %s1628_s19  ;;  %599 = vmatprep.subr.mxu1 %v1627_v0  ;;  %v458_v31 = vld [vmem:[#allocation3 + $0x8] sm:$0xff]  ;;  %v457_v33 = vld [vmem:[#allocation3] sm:$0xff]  ;;  %v476_v35 = vld [vmem:[#allocation3 + $0x98] sm:$0xff]  ;;  %s2008_s19 = sand.u32 1, %s1614_s22  }
  0x39   : > { %525 = vmatpush1.msra.mxu0 %v493_v12  ;;  %600 = vmatpush1.msra.mxu1 %v467_v13  ;;  %v483_v32 = vld [vmem:[#allocation3 + $0xa8] sm:$0xff]  ;;  %v482_v34 = vld [vmem:[#allocation3 + $0xa0] sm:$0xff]  ;;  %v501_v36 = vld [vmem:[#allocation3 + $0x138] sm:$0xff]  ;;  %s1293_s20 = sshll.u32 %s2008_s19, 3 }
  0x3a   : > { %526 = vmatprep.subr.mxu0 %v1627_v0  ;;  %601 = vmatprep.subr.mxu1 %v1627_v0  ;;  %v475_v37 = vld [vmem:[#allocation3 + $0x90] sm:$0xff]  ;;  %v474_v39 = vld [vmem:[#allocation3 + $0x88] sm:$0xff]  ;;  %v473_v41 = vld [vmem:[#allocation3 + $0x80] sm:$0xff]  ;;  %s423_s28 = scalar_lea.vmem [#allocation6], %s1293_s20  ;;  %s430_s15 = scalar_lea.vmem [#allocation7], %s1293_s20 }
  0x3b   : > { %527 = vmatpush1.msra.mxu0 %v492_v14  ;;  %602 = vmatpush1.msra.mxu1 %v466_v15  ;;  %v500_v38 = vld [vmem:[#allocation3 + $0x130] sm:$0xff]  ;;  %v499_v40 = vld [vmem:[#allocation3 + $0x128] sm:$0xff]  ;;  %v498_v42 = vld [vmem:[#allocation3 + $0x120] sm:$0xff]  ;;  %s1171_s29 = sshll.u32 %s423_s28, 4  ;;  %s1184_s16 = sshll.u32 %s430_s15, 4  ;;  %s2017_s29 = int_to_ptr.vmem [resolvable:$true] %s1171_s29  ;;  %s2024_s16 = int_to_ptr.vmem [resolvable:$true] %s1184_s16 }
  0x3c   : > { %528 = vmatprep.subr.mxu0 %v1627_v0  ;;  %603 = vmatprep.subr.mxu1 %v1627_v0  ;;  %v679_v58 = vld [vmem:[#allocation3 + $0x1b8] sm:$0xff]  ;;  %v678_v62 = vld [vmem:[#allocation3 + $0x1b0] sm:$0xff]  ;;  %v677_v63 = vld [vmem:[#allocation3 + $0x1a8] sm:$0xff]  ;;  %s1153_s20 = scalar_lea.sflag [#allocation5], %s2008_s19  ;;  %s1528_s17 = scalar_lea.vmem %s2017_s29, 128 }
  0x3d   : > { %529 = vmatpush1.msra.mxu0 %v491_v16  ;;  %604 = vmatpush1.msra.mxu1 %v465_v17  ;;  %v676_v1 = vld [vmem:[#allocation3 + $0x1a0] sm:$0xff]  ;;  %v675_v2 = vld [vmem:[#allocation3 + $0x198] sm:$0xff]  ;;  %v674_v3 = vld [vmem:[#allocation3 + $0x190] sm:$0xff]  ;;  %p1529_p6 = scmp.ne.s32.totalorder %s2017_s29, %s1528_s17 }
  0x3e   : > { %530 = vmatprep.subr.mxu0 %v1627_v0  ;;  %605 = vmatprep.subr.mxu1 %v1627_v0  ;;  %v673_v4 = vld [vmem:[#allocation3 + $0x188] sm:$0xff]  ;;  %v672_v5 = vld [vmem:[#allocation3 + $0x180] sm:$0xff]  ;;  %v671_v6 = vld [vmem:[#allocation3 + $0x178] sm:$0xff] }
  0x3f   : > { %531 = vmatpush1.msra.mxu0 %v490_v18  ;;  %606 = vmatpush1.msra.mxu1 %v464_v19  ;;  %v670_v7 = vld [vmem:[#allocation3 + $0x170] sm:$0xff]  ;;  %v669_v8 = vld [vmem:[#allocation3 + $0x168] sm:$0xff]  ;;  %v668_v9 = vld [vmem:[#allocation3 + $0x160] sm:$0xff]  ;;  %p1530_p9 = pnand %p1529_p6, %p1735_p5 }
  0x40   : > { %532 = vmatprep.subr.mxu0 %v1627_v0  ;;  %607 = vmatprep.subr.mxu1 %v1627_v0  ;;  %v667_v10 = vld [vmem:[#allocation3 + $0x158] sm:$0xff]  ;;  %v666_v11 = vld [vmem:[#allocation3 + $0x150] sm:$0xff]  ;;  %v665_v12 = vld [vmem:[#allocation3 + $0x148] sm:$0xff] }
  0x41   : > { %533 = vmatpush1.msra.mxu0 %v489_v20  ;;  %608 = vmatpush1.msra.mxu1 %v463_v21  ;;  %v664_v13 = vld [vmem:[#allocation3 + $0x140] sm:$0xff]  ;;  %v683_v14 = vld [vmem:[#allocation3 + $0x1d8] sm:$0xff]  ;;  %v682_v15 = vld [vmem:[#allocation3 + $0x1d0] sm:$0xff]  ;;  %p1531_p10 = pneg %p1530_p9 }
  0x42   : > { %534 = vmatprep.subr.mxu0 %v1627_v0  ;;  %609 = vmatprep.subr.mxu1 %v1627_v0  ;;  %v681_v18 = vld [vmem:[#allocation3 + $0x1c8] sm:$0xff]  ;;  %v680_v21 = vld [vmem:[#allocation3 + $0x1c0] sm:$0xff] }
  0x43   : > { %535 = vmatpush1.msra.mxu0 %v488_v22  ;;  %610 = vmatpush1.msra.mxu1 %v462_v23  ;;  %v792_v23 = vld [vmem:[%s2108_s3 + $0x78] sm:$0xff] }
  0x44   : > { %536 = vmatprep.subr.mxu0 %v1627_v0  ;;  %611 = vmatprep.subr.mxu1 %v1627_v0 }
  0x45   : > { %537 = vmatpush1.msra.mxu0 %v487_v24  ;;  %612 = vmatpush1.msra.mxu1 %v461_v25  ;;  %v791_v24 = vld [vmem:[%s2108_s3 + $0x70] sm:$0xff]  ;;  %v790_v25 = vld [vmem:[%s2108_s3 + $0x68] sm:$0xff] }
  0x46   : > { %538 = vmatprep.subr.mxu0 %v1627_v0  ;;  %613 = vmatprep.subr.mxu1 %v1627_v0 }
  0x47   : > { %539 = vmatpush1.msra.mxu0 %v486_v26  ;;  %614 = vmatpush1.msra.mxu1 %v460_v27  ;;  %v789_v26 = vld [vmem:[%s2108_s3 + $0x60] sm:$0xff]  ;;  %v788_v27 = vld [vmem:[%s2108_s3 + $0x58] sm:$0xff] }
  0x48   : > { %540 = vmatprep.subr.mxu0 %v1627_v0  ;;  %615 = vmatprep.subr.mxu1 %v1627_v0 }
  0x49   : > { %541 = vmatpush1.msra.mxu0 %v485_v28  ;;  %616 = vmatpush1.msra.mxu1 %v459_v29  ;;  %v787_v28 = vld [vmem:[%s2108_s3 + $0x50] sm:$0xff]  ;;  %v786_v29 = vld [vmem:[%s2108_s3 + $0x48] sm:$0xff] }
  0x4a   : > { %542 = vmatprep.subr.mxu0 %v1627_v0  ;;  %617 = vmatprep.subr.mxu1 %v1627_v0 }
  0x4b   : > { %543 = vmatpush1.msra.mxu0 %v484_v30  ;;  %618 = vmatpush1.msra.mxu1 %v458_v31  ;;  %v785_v30 = vld [vmem:[%s2108_s3 + $0x40] sm:$0xff]  ;;  %v784_v31 = vld [vmem:[%s2108_s3 + $0x38] sm:$0xff] }
  0x4c   : > { %544 = vmatprep.subr.mxu0 %v1627_v0  ;;  %619 = vmatprep.subr.mxu1 %v1627_v0 }
  0x4d   : > { %545 = vmatpush1.msra.mxu0 %v483_v32  ;;  %620 = vmatpush1.msra.mxu1 %v457_v33  ;;  %v783_v32 = vld [vmem:[%s2108_s3 + $0x30] sm:$0xff]  ;;  %v782_v33 = vld [vmem:[%s2108_s3 + $0x28] sm:$0xff] }
  0x4e   : > { %546 = vmatprep.subr.mxu0 %v1627_v0  ;;  %645 = vmatprep.subr.mxu1 %v1627_v0 }
  0x4f   : > { %547 = vmatpush1.msra.mxu0 %v482_v34  ;;  %646 = vmatpush2.msra.mxu1 %v476_v35  ;;  %v781_v34 = vld [vmem:[%s2108_s3 + $0x20] sm:$0xff]  ;;  %v780_v35 = vld [vmem:[%s2108_s3 + $0x18] sm:$0xff] }
  0x50   : > { %572 = vmatprep.subr.mxu0 %v1627_v0  ;;  %647 = vmatprep.subr.mxu1 %v1627_v0 }
  0x51   : > { %573 = vmatpush2.msra.mxu0 %v501_v36  ;;  %648 = vmatpush2.msra.mxu1 %v475_v37  ;;  %v779_v36 = vld [vmem:[%s2108_s3 + $0x10] sm:$0xff]  ;;  %v778_v37 = vld [vmem:[%s2108_s3 + $0x8] sm:$0xff] }
  0x52   : > { %574 = vmatprep.subr.mxu0 %v1627_v0  ;;  %649 = vmatprep.subr.mxu1 %v1627_v0 }
  0x53   : > { %575 = vmatpush2.msra.mxu0 %v500_v38  ;;  %650 = vmatpush2.msra.mxu1 %v474_v39  ;;  %v777_v38 = vld [vmem:[%s2108_s3] sm:$0xff]  ;;  %s1532_s3 = sshll.u32 %s1630_s18, 4  ;;  %s1533_s3 = int_to_ptr.vmem [resolvable:$false] %s1532_s3 }
  0x54   : > { %576 = vmatprep.subr.mxu0 %v1627_v0  ;;  %651 = vmatprep.subr.mxu1 %v1627_v0  ;;  %p1535_p11 = scmp.lt.s32.totalorder %s2017_s29, %s1533_s3 }
  0x55   : > { %577 = vmatpush2.msra.mxu0 %v499_v40  ;;  %652 = vmatpush2.msra.mxu1 %v473_v41 }
  0x56   : > { %578 = vmatprep.subr.mxu0 %v1627_v0  ;;  %1352 = vmatprep.subr.mxu1 %v1627_v0 }
  0x57   : > { %579 = vmatpush2.msra.mxu0 %v498_v42 }
  0x58   : > { %698 = vmatprep.subr.mxu0 %v1627_v0 }
  0xaa   : > { %v445_v43 = vpop.permute.xlu0 %444 }
  0xab   : > { %448 = vst.msk [vmem:[#allocation2] sm:$0xfe] %vm447_vm2, %v445_v43 }
  0xac   : > { %450 = vst.msk [vmem:[#allocation2 + $0x8] sm:$0xfe] %vm449_vm3, %v445_v43 }
  0xad   : > { %452 = vst.msk [vmem:[#allocation2 + $0x10] sm:$0x1] %vm451_vm4, %v445_v43 }
  0xae   : > { %454 = vst.msk [vmem:[#allocation2 + $0x18] sm:$0x1] %vm453_vm5, %v445_v43 }
  0xb2   : > { %v455_v45 = vld [vmem:[#allocation2] sm:$0xff] }
  0xb3   : > { %v456_v44 = vld [vmem:[#allocation2 + $0x8] sm:$0xff]  ;;  %v477_v49 = vld [vmem:[#allocation2] sm:$0xfe] }
  0xb4   : > { %v478_v46 = vld [vmem:[#allocation2 + $0x8] sm:$0xfe]  ;;  %1297 = vmatprep.mubr.msk.f32.mxu1 %vm436_vm0, %v456_v44  ;;  %v479_v51 = vld [vmem:[#allocation2 + $0x10] sm:$0x1]  ;;  %v507_v52 = vrot.slane %v477_v49, 1 }
  0xb5   : > { %v480_v47 = vld [vmem:[#allocation2 + $0x18] sm:$0x1]  ;;  %v510_v48 = vrot.slane %v478_v46, 1  ;;  %654 = vmatmul.mubr.f32.vlgmr.msra.gmra.mxu1 %v455_v45  ;;  %v660_v53 = vld [vmem:[#allocation2 + $0x8] sm:$0xfc]  ;;  %v508_v54 = vrot.slane %v479_v51, 1 }
  0xb6   : > { %v511_v50 = vrot.slane %v480_v47, 1  ;;  %v662_v55 = vld [vmem:[#allocation2 + $0x18] sm:$0x3]  ;;  %v692_v56 = vrot.slane %v660_v53, 2  ;;  %v659_v16 = vld [vmem:[#allocation2] sm:$0xfc]  ;;  %1353 = vmatpush3.msra.mxu1 %v792_v23  ;;  %1384 = vmatprep.mubr.msk.f32.mxu1 %vm1629_vm8, %v1627_v0 }
  0xb7   : > { %v693_v59 = vrot.slane %v662_v55, 2  ;;  %v509_v60 = vsel %vm506_vm6, %v507_v52, %v508_v54  ;;  %v661_v17 = vld [vmem:[#allocation2 + $0x10] sm:$0x3]  ;;  %v689_v19 = vrot.slane %v659_v16, 2  ;;  %1354 = vmatprep.subr.mxu1 %v1627_v0  ;;  %v1299_v45 = vld [vmem:[%s2109_s2] ss:$0 sm:$0xff]  ;;  %s2022_s2 = scalar_lea.hbm %s2097_s12, %s1309_s26 }
  0xb8   : > { %v512_v57 = vsel %vm506_vm6, %v510_v48, %v511_v50  ;;  %v690_v20 = vrot.slane %v661_v17, 2  ;;  %1355 = vmatpush3.msra.mxu1 %v791_v24  ;;  %v872_v49 = vld [vmem:[%s2090_s5 + $0x8] sm:$0xff]  ;;  %v871_v50 = vld [vmem:[%s2090_s5] sm:$0xff] }
  0xb9   : > { %1296 = vmatprep.mubr.msk.f32.mxu0 %vm436_vm0, %v512_v57  ;;  %v694_v61 = vsel %vm688_vm7, %v692_v56, %v693_v59  ;;  %1356 = vmatprep.subr.mxu1 %v1627_v0  ;;  %v1300_v51 = vld [vmem:[%s2110_s4] ss:$0 sm:$0xff]  ;;  %v984_v56 = vld [vmem:[%s2092_s7 + $0x78] sm:$0xff]  ;;  %v983_v57 = vld [vmem:[%s2092_s7 + $0x70] sm:$0xff]  ;;  %s1534_s4 = scalar_lea.vmem %s1533_s3, 256 }
  0xba   : > { %581 = vmatmul.mubr.f32.vlgmr.msra.gmra.mxu0 %v509_v60  ;;  %v691_v22 = vsel %vm688_vm7, %v689_v19, %v690_v20  ;;  %1357 = vmatpush3.msra.mxu1 %v790_v25  ;;  %v981_v59 = vld [vmem:[%s2092_s7 + $0x60] sm:$0xff]  ;;  %v980_v60 = vld [vmem:[%s2092_s7 + $0x58] sm:$0xff]  ;;  %p1536_p12 = scmp.lt.s32.totalorder %s1534_s4, %s1528_s17 }
  0xbb   : > { %699 = vmatpush1.msra.mxu0 %v679_v58  ;;  %1298 = vmatprep.mubr.msk.f32.mxu0 %vm436_vm0, %v694_v61  ;;  %v982_v58 = vld [vmem:[%s2092_s7 + $0x68] sm:$0xff]  ;;  %v979_v61 = vld [vmem:[%s2092_s7 + $0x50] sm:$0xff]  ;;  %v1057_v24 = vld [vmem:[%s2094_s9] sm:$0x3] }
  0xbc   : > { %700 = vmatprep.subr.mxu0 %v1627_v0  ;;  %1358 = vmatprep.subr.mxu1 %v1627_v0  ;;  %v985_v25 = vld [vmem:[%s2093_s8] sm:$0x1]  ;;  %p1537_p13 = por %p1536_p12, %p1535_p11 }
  0xbd   : > { %701 = vmatpush1.msra.mxu0 %v678_v62  ;;  %1359 = vmatpush3.msra.mxu1 %v789_v26  ;;  %v978_v62 = vld [vmem:[%s2092_s7 + $0x48] sm:$0xff] }
  0xbe   : > { %702 = vmatprep.subr.mxu0 %v1627_v0  ;;  %1360 = vmatprep.subr.mxu1 %v1627_v0  ;;  %p1538_p0 = pnand %p1537_p13, %p1531_p10 }
  0xbf   : > { %703 = vmatpush1.msra.mxu0 %v677_v63  ;;  %1361 = vmatpush3.msra.mxu1 %v788_v27  ;;  %v977_v63 = vld [vmem:[%s2092_s7 + $0x40] sm:$0xff] }
  0xc0   : > { %704 = vmatprep.subr.mxu0 %v1627_v0  ;;  %1362 = vmatprep.subr.mxu1 %v1627_v0 }
  0xc1   : > { %705 = vmatpush1.msra.mxu0 %v676_v1  ;;  %1363 = vmatpush3.msra.mxu1 %v787_v28  ;;  %v976_v1 = vld [vmem:[%s2092_s7 + $0x38] sm:$0xff] }
  0xc2   : > { %706 = vmatprep.subr.mxu0 %v1627_v0  ;;  %1364 = vmatprep.subr.mxu1 %v1627_v0 }
  0xc3   : > { %707 = vmatpush1.msra.mxu0 %v675_v2  ;;  %1365 = vmatpush3.msra.mxu1 %v786_v29  ;;  %v975_v2 = vld [vmem:[%s2092_s7 + $0x30] sm:$0xff] }
  0xc4   : > { %708 = vmatprep.subr.mxu0 %v1627_v0  ;;  %1366 = vmatprep.subr.mxu1 %v1627_v0 }
  0xc5   : > { %709 = vmatpush1.msra.mxu0 %v674_v3  ;;  %1367 = vmatpush3.msra.mxu1 %v785_v30  ;;  %v974_v3 = vld [vmem:[%s2092_s7 + $0x28] sm:$0xff]  ;;  %v1058_v30 = vld [vmem:[%s2095_s10] sm:$0x1] }
  0xc6   : > { %710 = vmatprep.subr.mxu0 %v1627_v0  ;;  %1368 = vmatprep.subr.mxu1 %v1627_v0 }
  0xc7   : > { %711 = vmatpush1.msra.mxu0 %v673_v4  ;;  %1369 = vmatpush3.msra.mxu1 %v784_v31  ;;  %v973_v4 = vld [vmem:[%s2092_s7 + $0x20] sm:$0xff] }
  0xc8   : > { %712 = vmatprep.subr.mxu0 %v1627_v0  ;;  %1370 = vmatprep.subr.mxu1 %v1627_v0 }
  0xc9   : > { %713 = vmatpush1.msra.mxu0 %v672_v5  ;;  %1371 = vmatpush3.msra.mxu1 %v783_v32  ;;  %v972_v5 = vld [vmem:[%s2092_s7 + $0x18] sm:$0xff] }
  0xca   : > { %714 = vmatprep.subr.mxu0 %v1627_v0  ;;  %1372 = vmatprep.subr.mxu1 %v1627_v0 }
  0xcb   : > { %715 = vmatpush1.msra.mxu0 %v671_v6  ;;  %1373 = vmatpush3.msra.mxu1 %v782_v33  ;;  %v971_v6 = vld [vmem:[%s2092_s7 + $0x10] sm:$0xff] }
  0xcc   : > { %716 = vmatprep.subr.mxu0 %v1627_v0  ;;  %1374 = vmatprep.subr.mxu1 %v1627_v0 }
  0xcd   : > { %717 = vmatpush1.msra.mxu0 %v670_v7  ;;  %1375 = vmatpush3.msra.mxu1 %v781_v34  ;;  %v970_v7 = vld [vmem:[%s2092_s7 + $0x8] sm:$0xff] }
  0xce   : > { %718 = vmatprep.subr.mxu0 %v1627_v0  ;;  %1376 = vmatprep.subr.mxu1 %v1627_v0 }
  0xcf   : > { %719 = vmatpush1.msra.mxu0 %v669_v8  ;;  %1377 = vmatpush3.msra.mxu1 %v780_v35  ;;  %v969_v8 = vld [vmem:[%s2092_s7] sm:$0xff] }
  0xd0   : > { %720 = vmatprep.subr.mxu0 %v1627_v0  ;;  %1378 = vmatprep.subr.mxu1 %v1627_v0 }
  0xd1   : > { %721 = vmatpush1.msra.mxu0 %v668_v9  ;;  %1379 = vmatpush3.msra.mxu1 %v779_v36  ;;  %v1301_v9 = vld [vmem:[%s2091_s6] ss:$0 sm:$0xff] }
  0xd2   : > { %722 = vmatprep.subr.mxu0 %v1627_v0  ;;  %1380 = vmatprep.subr.mxu1 %v1627_v0 }
  0xd3   : > { %723 = vmatpush1.msra.mxu0 %v667_v10  ;;  %1381 = vmatpush3.msra.mxu1 %v778_v37  ;;  %v1143_v37 = vlaneseq }
  0xd4   : > { %724 = vmatprep.subr.mxu0 %v1627_v0  ;;  %1382 = vmatprep.subr.mxu1 %v1627_v0 }
  0xd5   : > { %725 = vmatpush1.msra.mxu0 %v666_v11  ;;  %1383 = vmatpush3.msra.mxu1 %v777_v38  ;;  %v1144_v38 = vshrl.u32 %v1143_v37, 7 }
  0xd6   : > { %726 = vmatprep.subr.mxu0 %v1627_v0  ;;  %1394 = vmatprep.subr.mxu1 %v1627_v0 }
  0xd7   : > { %727 = vmatpush1.msra.mxu0 %v665_v12 }
  0xd8   : > { %728 = vmatprep.subr.mxu0 %v1627_v0 }
  0xd9   : > { %729 = vmatpush1.msra.mxu0 %v664_v13 }
  0xda   : > { %754 = vmatprep.subr.mxu0 %v1627_v0 }
  0xdb   : > { %755 = vmatpush2.msra.mxu0 %v683_v14 }
  0xdc   : > { %756 = vmatprep.subr.mxu0 %v1627_v0 }
  0xdd   : > { %757 = vmatpush2.msra.mxu0 %v682_v15 }
  0xde   : > { %758 = vmatprep.subr.mxu0 %v1627_v0 }
  0xdf   : > { %759 = vmatpush2.msra.mxu0 %v681_v18 }
  0xe0   : > { %760 = vmatprep.subr.mxu0 %v1627_v0 }
  0xe1   : > { %761 = vmatpush2.msra.mxu0 %v680_v21 }
  0xe2   : > { %763 = vmatmul.mubr.f32.vlgmr.msra.gmra.mxu0 %v691_v22  ;;  %1387 = vmatprep.subr.mxu0 %v1627_v0 }
  0xe3   : > { %1391 = vmatprep.mubr.msk.f32.mxu0 %vm1629_vm8, %v1627_v0  ;;  %1388 = vmatpush3.msra.mxu0 %v872_v49 }
  0xe4   : > { %1389 = vmatprep.subr.mxu0 %v1627_v0 }
  0xe5   : > { %1390 = vmatpush3.msra.mxu0 %v871_v50 }
  0xe6   : > { %1429 = vmatprep.subr.mxu0 %v1627_v0 }
 0x175   : > { %v655_v39 = vpop.f32.mrf.mxu1 }
 0x177   : > { %v657_v40 = vpop.f32.mrf.mxu1 }
 0x17a   : > { %v582_v41 = vpop.f32.mrf.mxu0 }
 0x17b   : > { %v656_v43 = vadd.f32 %v655_v39, %v582_v41  ;;  %v1145_v39 = vsub.s32 0, %v1144_v38 }
 0x17c   : > { %v584_v42 = vpop.f32.mrf.mxu0 }
 0x1a2   : > { %v764_v44 = vpop.f32.mrf.mxu0 }
 0x1a3   : > { %v768_v46 = vadd.f32 %v764_v44, %v656_v43 }
 0x1a4   : > { %v766_v47 = vpop.f32.mrf.mxu0 }
 0x1a5   : > { %v1913_v48 = vadd.f32 %v1299_v45, %v768_v46 }
 0x1a7   : > { %1385 = vmatmul.mubr.f32.vlgmr.msra.gmra.mxu1 %v1913_v48 }
 0x1a8   : > { %1426 = vmatprep.mubr.msk.f32.mxu1 %vm1629_vm8, %v1627_v0  ;;  %1395 = vmatpush3.msra.mxu1 %v984_v56 }
 0x1a9   : > { %1396 = vmatprep.subr.mxu1 %v1627_v0 }
 0x1aa   : > { %1397 = vmatpush3.msra.mxu1 %v983_v57 }
 0x1ab   : > { %1398 = vmatprep.subr.mxu1 %v1627_v0 }
 0x1ac   : > { %1399 = vmatpush3.msra.mxu1 %v982_v58 }
 0x1ad   : > { %1400 = vmatprep.subr.mxu1 %v1627_v0 }
 0x1ae   : > { %1401 = vmatpush3.msra.mxu1 %v981_v59 }
 0x1af   : > { %1402 = vmatprep.subr.mxu1 %v1627_v0 }
 0x1b0   : > { %1403 = vmatpush3.msra.mxu1 %v980_v60 }
 0x1b1   : > { %1404 = vmatprep.subr.mxu1 %v1627_v0 }
 0x1b2   : > { %1405 = vmatpush3.msra.mxu1 %v979_v61 }
 0x1b3   : > { %1406 = vmatprep.subr.mxu1 %v1627_v0 }
 0x1b4   : > { %1407 = vmatpush3.msra.mxu1 %v978_v62 }
 0x1b5   : > { %1408 = vmatprep.subr.mxu1 %v1627_v0 }
 0x1b6   : > { %1409 = vmatpush3.msra.mxu1 %v977_v63 }
 0x1b7   : > { %1410 = vmatprep.subr.mxu1 %v1627_v0 }
 0x1b8   : > { %1411 = vmatpush3.msra.mxu1 %v976_v1 }
 0x1b9   : > { %1412 = vmatprep.subr.mxu1 %v1627_v0 }
 0x1ba   : > { %1413 = vmatpush3.msra.mxu1 %v975_v2 }
 0x1bb   : > { %1414 = vmatprep.subr.mxu1 %v1627_v0 }
 0x1bc   : > { %1415 = vmatpush3.msra.mxu1 %v974_v3 }
 0x1bd   : > { %1416 = vmatprep.subr.mxu1 %v1627_v0 }
 0x1be   : > { %1417 = vmatpush3.msra.mxu1 %v973_v4 }
 0x1bf   : > { %1418 = vmatprep.subr.mxu1 %v1627_v0 }
 0x1c0   : > { %1419 = vmatpush3.msra.mxu1 %v972_v5 }
 0x1c1   : > { %1420 = vmatprep.subr.mxu1 %v1627_v0 }
 0x1c2   : > { %1421 = vmatpush3.msra.mxu1 %v971_v6 }
 0x1c3   : > { %1422 = vmatprep.subr.mxu1 %v1627_v0 }
 0x1c4   : > { %1423 = vmatpush3.msra.mxu1 %v970_v7 }
 0x1c5   : > { %1424 = vmatprep.subr.mxu1 %v1627_v0 }
 0x1c6   : > { %1425 = vmatpush3.msra.mxu1 %v969_v8 }
 0x267   : > { %v866_v52 = vpop.f32.mrf.mxu1 }
 0x268   : > { %v867_v53 = vadd.f32 %v1300_v51, %v866_v52 }
 0x269   : > { %v1386_v54 = vpop.f32.mrf.mxu1 }
 0x26a   : > { %v870_v55 = vmax.f32 %v867_v53, 0.0 }
 0x26c   : > { %1392 = vmatmul.mubr.msk.f32.vlgmr.msra.gmra.mxu0 %vm880_vm9, %v870_v55 }
 0x26d   : > { %1431 = vmatprep.mubr.msk.f32.mxu0 %vm1629_vm8, %v1627_v0  ;;  %1430 = vmatpush3.msk.msra.mxu0 %vm1063_vm10, %v1057_v24 }
 0x32c   : > { %v950_v10 = vpop.f32.mrf.mxu0 }
 0x32d   : > { %v951_v11 = vadd.f32 %v1301_v9, %v950_v10 }
 0x32e   : > { %v1393_v12 = vpop.f32.mrf.mxu0 }
 0x32f   : > { %v1303_v13 = vmul.f32 -1.442695, %v951_v11 }
 0x331   : > { %1494 = vpow2.f32 %v1303_v13 }
 0x33e   : > { %v1495_v14 = vpop.eup %1494 }
 0x33f   : > { %v957_v15 = vadd.f32 1.0, %v1495_v14 }
 0x341   : > { %1496 = vrcp.f32 %v957_v15 }
 0x34e   : > { %v1497_v16 = vpop.eup %1496 }
 0x34f   : > { %v960_v17 = vmul.f32 %v1497_v16, %v1913_v48 }
 0x351   : > { %v961_v18 = vrot.slane %v960_v17, 4 }
 0x353   : > { %v962_v19 = vadd.f32 %v961_v18, %v960_v17 }
 0x355   : > { %v963_v20 = vrot.slane %v962_v19, 2 }
 0x357   : > { %v964_v0 = vadd.f32 %v963_v20, %v962_v19 }
 0x359   : > { %v965_v21 = vrot.slane %v964_v0, 1 }
 0x35b   : > { %v966_v22 = vadd.f32 %v965_v21, %v964_v0 }
 0x35d   : > { %v968_v23 = vmul.f32 0.125, %v966_v22 }
 0x35f   : > { %1427 = vmatmul.mubr.f32.vlgmr.msra.gmra.mxu1 %v968_v23 }
 0x41f   : > { %v1052_v26 = vpop.f32.mrf.mxu1 }
 0x420   : > { %v1053_v27 = vadd.f32 %v1052_v26, %v985_v25 }
 0x421   : > { %v1428_v28 = vpop.f32.mrf.mxu1 }
 0x422   : > { %v1056_v29 = vmax.f32 %v1053_v27, 0.0 }
 0x424   : > { %1432 = vmatmul.mubr.msk.f32.vlgmr.msra.gmra.mxu0 %vm1059_vm11, %v1056_v29 }
 0x4e4   : > { %v1133_v31 = vpop.f32.mrf.mxu0 }
 0x4e5   : > { %v1134_v32 = vadd.f32 %v1133_v31, %v1058_v30 }
 0x4e6   : > { %v1433_v33 = vpop.f32.mrf.mxu0 }
 0x4e7   : > { %v1306_v34 = vmul.f32 -1.442695, %v1134_v32 }
 0x4e9   : > { %1498 = vpow2.f32 %v1306_v34 }
 0x4f6   : > { %v1499_v35 = vpop.eup %1498 }
 0x4f7   : > { %v1140_v36 = vadd.f32 1.0, %v1499_v35 }
 0x4f9   : > { %1500 = vrcp.f32 %v1140_v36 }
 0x506   : > { %v1501_v40 = vpop.eup %1500 }
 0x507   : > { %v1146_v41 = vrot.slane %v1501_v40, %v1145_v39 }
 0x509   : > { %v1147_v42 = vmul.f32 %v1146_v41, %v960_v17 }
 0x50b   : > { %v1148_v43 = vmax.f32 %v1147_v42, 0.0  ;;  %v1150_v44 = vmin.f32 %v1147_v42, 0.0 }
 0x50d   : > { %1149 = vst [vmem:[%s423_s28] sm:$0xff] %v1148_v43  ;;  %1151 = vst [vmem:[%s430_s15] sm:$0xff] %v1150_v44 }
 0x50e   : > { %1541 = shalt.err (!%p1538_p0)
}
 0x50f   : > { %s1542_s1 = scalar_lea.hbm %s2015_s0, 128  ;;  %s1546_s15 = scalar_lea.hbm %s2096_s11, 256 }
 0x510   : > { %p1543_p1 = scmp.ne.s32.totalorder %s2015_s0, %s1542_s1  ;;  %p1547_p4 = scmp.lt.s32.totalorder %s2015_s0, %s2096_s11 }
 0x511   : > { %p1548_p7 = scmp.lt.s32.totalorder %s1546_s15, %s1542_s1 }
 0x512   : > { %p1544_p2 = pnand %p1543_p1, %p1735_p5 }
 0x513   : > { %p1549_p8 = por %p1548_p7, %p1547_p4 }
 0x514   : > { %p1545_p3 = pneg %p1544_p2 }
 0x516   : > { %p1550_p6 = pnand %p1549_p8, %p1545_p3 }
 0x518   : > { %1553 = shalt.err (!%p1550_p6)
}
 0x519   : > { %1438 = dma.vmem_to_hbm [thread:$0]  (%p1735_p5), %s2017_s29, 128, %s2015_s0, %s1153_s20  }
 0x51a   : > { %s1158_s3 = scalar_lea.sflag [#allocation8], %s2008_s19  ;;  %s1554_s4 = scalar_lea.vmem %s2024_s16, 128 }
 0x51b   : > { %p1555_p9 = scmp.ne.s32.totalorder %s2024_s16, %s1554_s4  ;;  %s1631_s17 = smov [#allocation7]  }
 0x51c   : > { %s1558_s1 = sshll.u32 %s1631_s17, 4  ;;  %s1559_s1 = int_to_ptr.vmem [resolvable:$false] %s1558_s1 }
 0x51d   : > { %p1556_p10 = pnand %p1555_p9, %p1735_p5  ;;  %s1560_s26 = scalar_lea.vmem %s1559_s1, 256 }
 0x51e   : > { %p1561_p12 = scmp.lt.s32.totalorder %s2024_s16, %s1559_s1  ;;  %p1562_p13 = scmp.lt.s32.totalorder %s1560_s26, %s1554_s4 }
 0x51f   : > { %p1557_p11 = pneg %p1556_p10 }
 0x520   : > { %p1563_p0 = por %p1562_p13, %p1561_p12 }
 0x522   : > { %p1564_p1 = pnand %p1563_p0, %p1557_p11 }
 0x524   : > { %1567 = shalt.err (!%p1564_p1)
}
 0x525   : > { %s1568_s0 = scalar_lea.hbm %s2022_s2, 128  ;;  %s1572_s20 = scalar_lea.hbm %s2097_s12, 256 }
 0x526   : > { %p1569_p2 = scmp.ne.s32.totalorder %s2022_s2, %s1568_s0  ;;  %p1573_p7 = scmp.lt.s32.totalorder %s2022_s2, %s2097_s12 }
 0x527   : > { %p1574_p8 = scmp.lt.s32.totalorder %s1572_s20, %s1568_s0 }
 0x528   : > { %p1570_p3 = pnand %p1569_p2, %p1735_p5 }
 0x529   : > { %p1575_p6 = por %p1574_p8, %p1573_p7 }
 0x52a   : > { %p1571_p4 = pneg %p1570_p3 }
 0x52c   : > { %p1576_p9 = pnand %p1575_p6, %p1571_p4 }
 0x52e   : > { %1579 = shalt.err (!%p1576_p9)
}
 0x52f   : > { %1439 = dma.vmem_to_hbm [thread:$0]  (%p1735_p5), %s2024_s16, 128, %s2022_s2, %s1158_s3  }
 0x530 PF: > { %p1455_p10 = scmp.ge.s32.totalorder %s1622_s24, 2  ;;  %s1196_s25 = sand.u32 1, %s1610_s21  }
 0x531   : > { %p2111_p11 = scmp.ne.s32.totalorder %s2104_s14, 0  ;;  %s1197_s18 = scalar_lea.sflag [#allocation5], %s1196_s25 }
 0x533   : > { %p1447_p12 = pnand %p1455_p10, %p2111_p11 }
 0x535   : > { %p1448_p13 = pneg %p1447_p12 }
 0x537   : > { %1601 = dma.done.wait (%p1448_p13), %s1197_s18, 128  }
 0x538   : > { %1603 = vsyncadd (%p1448_p13), %s1197_s18, 4294967168  ;;  %s1206_s4 = scalar_lea.sflag [#allocation8], %s1196_s25 }
 0x539   : > { %1605 = dma.done.wait (%p1448_p13), %s1206_s4, 128  }
 0x53a   : > { %1607 = vsyncadd (%p1448_p13), %s1206_s4, 4294967168  ;;  %p27_p5 = scmp.ge.s32.totalorder %s1722_s27, 4   ;;  %s2112_s21 = smov %s1614_s22 }
 0x53b   : > { %s2113_s22 = smov %s1618_s23  ;;  %s2114_s23 = smov %s1733_s30 }
 0x53c   : > { %s2115_s24 = smov %s1722_s27  ;;  %29 = sbr.rel (!%p27_p5) target bundleno = 12 (0xc), region = 123 }
 0x541   :  { %1211 = vsyncpa [#allocation4], 1 }
 0x542   :  { %1213 = vsyncpa [#allocation4 + $0x1], 1 }
 0x543   :  { %1214 = vsyncpa [#allocation5], 1 }
 0x544   :  { %1216 = vsyncpa [#allocation5 + $0x1], 1 }
 0x545   :  { %1217 = vsyncpa [#allocation8], 1 }
 0x546   :  { %1219 = vsyncpa [#allocation8 + $0x1], 1 }

</bundles_post_ra>
